<compile_context>
chip_gen: v7x
topology: tpu7x:2x2x1
jax: 0.10.0
libtpu: 0.0.40
codegen_flags: <defaults>
</compile_context>

<pallas_src>
import math
import functools

import jax
import jax.numpy as jnp
from jax import lax
from jax.experimental import pallas as pl
from jax.experimental.pallas import tpu as pltpu


def _attn_kernel(x_ref, w_ref, o_ref, *, heads_per_block, seq, d_model):
    # x_ref: (M, DP)  M = heads_per_block * seq stacked head rows; lanes >= d_model are zero.
    # w_ref: (DP, DP) key projection, already scaled by 1/sqrt(H), zero-padded.
    # o_ref: (M, d_model) unpadded output tile.
    x = x_ref[...].astype(jnp.float32)          # q and v
    w = w_ref[...].astype(jnp.float32)

    # k = x @ (key / sqrt(H)) -- one MXU call for every head in this block.
    k = jnp.dot(x, w, preferred_element_type=jnp.float32)            # (M, DP)

    # scores = q @ k^T, contraction over the feature axis (padded lanes are zero -> inert).
    s = lax.dot_general(
        x, k,
        dimension_numbers=(((1,), (1,)), ((), ())),
        preferred_element_type=jnp.float32,
    )                                                                 # (M, M)

    if heads_per_block > 1:
        # Block-diagonal mask: a query row may only attend to keys of its own head.
        m_rows = heads_per_block * seq
        row_h = lax.broadcasted_iota(jnp.int32, (m_rows, m_rows), 0) // seq
        col_h = lax.broadcasted_iota(jnp.int32, (m_rows, m_rows), 1) // seq
        s = jnp.where(row_h == col_h, s, jnp.float32(-1e30))

    # Numerically stable softmax with an exact divide (approx reciprocal caused the
    # previous tolerance failure and buys nothing at this size).
    s_max = jnp.max(s, axis=-1, keepdims=True)
    p = jnp.exp(s - s_max)
    p = p / jnp.sum(p, axis=-1, keepdims=True)

    # out = attention_weights @ v  (v = x). Cross-head columns of p are zero, so the
    # stacked matmul reproduces per-head attention exactly. Write only the real d_model lanes.
    out = jnp.dot(p, x, preferred_element_type=jnp.float32)           # (M, DP)
    o_ref[...] = out[:, :d_model].astype(o_ref.dtype)


@jax.jit
def sdp_attention(x1, key_param):
    """x1: (B, H, S, D), key_param: (1, 1, D, D) -> (B, H, S, D).

    Matches the PyTorch module exactly, including its quirky inv_scale = sqrt(H)
    (sqrt of the head count k.size(1), NOT sqrt(d_k)) and the broadcast of `key` over B, H.
    """
    B, H, S, D = x1.shape
    assert key_param.shape[-2:] == (D, D), "key must be (..., D, D)"
    BH = B * H
    scale = 1.0 / math.sqrt(H)                      # mirrors the module's sqrt(k.size(1))

    # Lane-dense padding of the contraction axis only (single fused pad op per operand).
    DP = ((D + 127) // 128) * 128

    x2 = jnp.pad(x1.reshape(BH * S, D), ((0, 0), (0, DP - D)))
    w = key_param.reshape(D, D).astype(x1.dtype) * jnp.asarray(scale, x1.dtype)
    w = jnp.pad(w, ((0, DP - D), (0, DP - D)))

    # Fold heads: 2 grid steps when BH is even (so v7x's second TensorCore gets work),
    # otherwise a single step (v5e/v6e have one TC; per-step overhead dominates tiny tiles).
    num_blocks = 2 if (BH % 2 == 0 and BH >= 2) else 1
    heads_per_block = BH // num_blocks
    M = heads_per_block * S

    kernel = functools.partial(
        _attn_kernel, heads_per_block=heads_per_block, seq=S, d_model=D)

    out = pl.pallas_call(
        kernel,
        out_shape=jax.ShapeDtypeStruct((BH * S, D), x1.dtype),
        grid=(num_blocks,),
        in_specs=[
            pl.BlockSpec((M, DP), lambda i: (i, 0)),     # stacked q/v rows for this block
            pl.BlockSpec((DP, DP), lambda i: (0, 0)),    # shared, pre-scaled key weights
        ],
        out_specs=pl.BlockSpec((M, D), lambda i: (i, 0)),  # unpadded output tile
        compiler_params=pltpu.CompilerParams(
            dimension_semantics=("parallel",)),
    )(x2, w)

    return out.reshape(B, H, S, D)


def _reference(x1, key_param):
    B, H, S, D = x1.shape
    inv_scale = math.sqrt(H)
    w = key_param.reshape(D, D)
    k = jnp.einsum("bhsd,de->bhse", x1, w)
    s = jnp.einsum("bhqd,bhkd->bhqk", x1, k) / inv_scale
    p = jax.nn.softmax(s, axis=-1)
    return jnp.einsum("bhqk,bhkd->bhqd", p, x1)


if __name__ == "__main__":
    rng = jax.random.PRNGKey(0)
    k1, k2, k3 = jax.random.split(rng, 3)

    S, D = 8, 5  # consistent with the module's key parameter (1, 1, 5, 5)
    key_param = jax.random.normal(k3, (1, 1, D, D), dtype=jnp.float32)

    # Case 1: exactly the module's configuration (B = H = 1) -> single grid step.
    x_a = jax.random.normal(k1, (1, 1, S, D), dtype=jnp.float32)
    out_a = jax.block_until_ready(sdp_attention(x_a, key_param))
    ref_a = _reference(x_a, key_param)
    assert out_a.shape == (1, 1, S, D)
    assert jnp.allclose(out_a, ref_a, atol=1e-3, rtol=1e-3), "mismatch vs reference (B=H=1)"

    # Case 2: batched heads -> 2 grid steps of 2 folded heads each (exercises the mask path).
    x_b = jax.random.normal(k2, (2, 2, S, D), dtype=jnp.float32)
    out_b = jax.block_until_ready(sdp_attention(x_b, key_param))
    ref_b = _reference(x_b, key_param)
    assert out_b.shape == (2, 2, S, D)
    assert jnp.allclose(out_b, ref_b, atol=1e-3, rtol=1e-3), "mismatch vs reference (B=2,H=2)"

    print("KERNEL_OK")
</pallas_src>

<mosaic_0001>
module attributes {stable_mosaic.version = 11 : i64} {
  func.func @_attn_kernel(%arg0: i32, %arg1: memref<8x128xf32, #tpu.memory_space<vmem>>, %arg2: memref<128x128xf32, #tpu.memory_space<vmem>>, %arg3: memref<8x5xf32, #tpu.memory_space<vmem>>) attributes {dimension_semantics = [#tpu.dimension_semantics<parallel>], iteration_bounds = array<i64: 1>, scalar_prefetch = 0 : i64, scratch_operands = 0 : i64, tpu.core_type = #tpu.core_type<tc>, window_params = [{transform_indices = @transform_0, window_bounds = array<i64: 8, 128>}, {pipeline_mode = #tpu.pipeline_mode<synchronous>, transform_indices = @transform_1, window_bounds = array<i64: 128, 128>}, {transform_indices = @transform_2, window_bounds = array<i64: 8, 5>}]} {
    %c0 = arith.constant 0 : index
    %c0_0 = arith.constant 0 : index
    %0 = vector.load %arg1[%c0, %c0_0] : memref<8x128xf32, #tpu.memory_space<vmem>>, vector<8x128xf32>
    %c0_1 = arith.constant 0 : index
    %c0_2 = arith.constant 0 : index
    %1 = vector.load %arg2[%c0_1, %c0_2] : memref<128x128xf32, #tpu.memory_space<vmem>>, vector<128x128xf32>
    %cst = arith.constant dense<0.000000e+00> : vector<8x128xf32>
    %2 = tpu.matmul %0, %1, %cst {dimension_numbers = #tpu.dot_dimension_numbers<[1], [0], [0], [1], [0, 0, 1, 1], [], []>} : vector<8x128xf32>, vector<128x128xf32>, vector<8x128xf32> -> vector<8x128xf32>
    %cst_3 = arith.constant dense<0.000000e+00> : vector<8x8xf32>
    %3 = tpu.matmul %0, %2, %cst_3 {dimension_numbers = #tpu.dot_dimension_numbers<[1], [1], [0], [0], [0, 0, 1, 0], [], []>} : vector<8x128xf32>, vector<8x128xf32>, vector<8x8xf32> -> vector<8x8xf32>
    %cst_4 = arith.constant dense<0xFF800000> : vector<8xf32>
    %4 = vector.multi_reduction <maximumf>, %3, %cst_4 [1] : vector<8x8xf32> to vector<8xf32>
    %5 = vector.shape_cast %4 : vector<8xf32> to vector<8x1xf32>
    %6 = vector.broadcast %5 : vector<8x1xf32> to vector<8x8xf32>
    %7 = arith.subf %3, %6 : vector<8x8xf32>
    %8 = math.exp %7 : vector<8x8xf32>
    %cst_5 = arith.constant dense<0.000000e+00> : vector<8xf32>
    %9 = vector.multi_reduction <add>, %8, %cst_5 [1] : vector<8x8xf32> to vector<8xf32>
    %10 = vector.shape_cast %9 : vector<8xf32> to vector<8x1xf32>
    %11 = vector.broadcast %10 : vector<8x1xf32> to vector<8x8xf32>
    %12 = arith.divf %8, %11 : vector<8x8xf32>
    %cst_6 = arith.constant dense<0.000000e+00> : vector<8x128xf32>
    %13 = tpu.matmul %12, %0, %cst_6 {dimension_numbers = #tpu.dot_dimension_numbers<[1], [0], [0], [1], [0, 0, 1, 1], [], []>} : vector<8x8xf32>, vector<8x128xf32>, vector<8x128xf32> -> vector<8x128xf32>
    %14 = vector.extract_strided_slice %13 {offsets = [0, 0], sizes = [8, 5], strides = [1, 1]} : vector<8x128xf32> to vector<8x5xf32>
    %c0_7 = arith.constant 0 : index
    %c0_8 = arith.constant 0 : index
    %15 = vector.load %arg3[%c0_7, %c0_8] : memref<8x5xf32, #tpu.memory_space<vmem>>, vector<8x5xf32>
    tpu.vector_store %arg3[%c0_7, %c0_8], %14 {strides = array<i32>} : memref<8x5xf32, #tpu.memory_space<vmem>>, vector<8x5xf32>,
    return
  }
  func.func @transform_0(%arg0: i32) -> (i32, i32) {
    %c0_i32 = arith.constant 0 : i32
    %c0_i32_0 = arith.constant 0 : i32
    return %arg0, %c0_i32 : i32, i32
  }
  func.func @transform_1(%arg0: i32) -> (i32, i32) {
    %c0_i32 = arith.constant 0 : i32
    %c0_i32_0 = arith.constant 0 : i32
    %c0_i32_1 = arith.constant 0 : i32
    return %c0_i32, %c0_i32_0 : i32, i32
  }
  func.func @transform_2(%arg0: i32) -> (i32, i32) {
    %c0_i32 = arith.constant 0 : i32
    %c0_i32_0 = arith.constant 0 : i32
    return %arg0, %c0_i32 : i32, i32
  }
}

</mosaic_0001>

<bundles_post_ra>
// kernel: sdp_attention.1
= control target key start
LH: loop header
LB: loop body
LE: loop exit
PB: predicated region body
PF: predicated region fallthrough
CT: control target
= control target key end

     0   :  { %v357_v0 = vmov 0.0|0.0   ;;  %vm358_vm0 = vmmov 0   ;;  %v359_v4 = vmov 0.0   ;;  %vm168_vm1 = vcmask 64512   ;;  %s435_s1 = inlined_call_operand.vmem [shape: f32[128,128], index: 1, kind: input, shape index: {}]   ;;  %s436_s0 = inlined_call_operand.vmem [shape: f32[8,128], index: 0, kind: input, shape index: {}]   ;;  %s437_s2 = inlined_call_operand.vmem [shape: f32[8,5], index: 2, kind: output, shape index: {}]  }
   0x1   :  { %326 = vmatprep.subr.bf16.mxu0 %v357_v0  ;;  %v12_v1 = vld [vmem:[%s435_s1] sm:$0xff]  ;;  %v13_v2 = vld [vmem:[%s435_s1 + $0x8] sm:$0xff]  ;;  %v14_v3 = vld [vmem:[%s435_s1 + $0x10] sm:$0xff]  ;;  %313 = vmatprep.mubr.msk.f32.mxu0 %vm358_vm0, %v359_v4  ;;  %vm253_vm2 = vcmask 39936  }
   0x2   :  { %v327_v5 = vpack.c.bf16 %v13_v2, %v12_v1  ;;  %v15_v6 = vld [vmem:[%s435_s1 + $0x18] sm:$0xff]  ;;  %316 = vmatprep.subr.mxu1 %v359_v4  ;;  %318 = vmatprep.mubr.msk.f32.mxu1 %vm358_vm0, %v359_v4  ;;  %v16_v8 = vld [vmem:[%s435_s1 + $0x20] sm:$0xff]  ;;  %v17_v9 = vld [vmem:[%s435_s1 + $0x28] sm:$0xff] }
   0x3   :  { %v330_v7 = vpack.c.bf16 %v15_v6, %v14_v3  ;;  %v333_v10 = vpack.c.bf16 %v17_v9, %v16_v8  ;;  %v18_v11 = vld [vmem:[%s435_s1 + $0x30] sm:$0xff]  ;;  %v19_v12 = vld [vmem:[%s435_s1 + $0x38] sm:$0xff]  ;;  %v20_v14 = vld [vmem:[%s435_s1 + $0x40] sm:$0xff] }
   0x4   :  { %328 = vmatpush3.bf16.msra.mxu0 %v327_v5  ;;  %v336_v13 = vpack.c.bf16 %v19_v12, %v18_v11  ;;  %v21_v15 = vld [vmem:[%s435_s1 + $0x48] sm:$0xff]  ;;  %v22_v17 = vld [vmem:[%s435_s1 + $0x50] sm:$0xff]  ;;  %v23_v18 = vld [vmem:[%s435_s1 + $0x58] sm:$0xff] }
   0x5   :  { %329 = vmatprep.subr.bf16.mxu0 %v357_v0  ;;  %v339_v16 = vpack.c.bf16 %v21_v15, %v20_v14  ;;  %v342_v19 = vpack.c.bf16 %v23_v18, %v22_v17  ;;  %v24_v20 = vld [vmem:[%s435_s1 + $0x60] sm:$0xff]  ;;  %v25_v21 = vld [vmem:[%s435_s1 + $0x68] sm:$0xff]  ;;  %v26_v23 = vld [vmem:[%s435_s1 + $0x70] sm:$0xff] }
   0x6   :  { %v345_v22 = vpack.c.bf16 %v25_v21, %v24_v20  ;;  %v27_v24 = vld [vmem:[%s435_s1 + $0x78] sm:$0xff]  ;;  %v11_v26 = vld [vmem:[%s436_s0] sm:$0xff] }
   0x7   :  { %v348_v25 = vpack.c.bf16 %v27_v24, %v26_v23 }
   0x8   :  { %331 = vmatpush3.bf16.msra.mxu0 %v330_v7 }
   0x9   :  { %332 = vmatprep.subr.bf16.mxu0 %v357_v0 }
   0xc   :  { %334 = vmatpush3.bf16.msra.mxu0 %v333_v10 }
   0xd   :  { %335 = vmatprep.subr.bf16.mxu0 %v357_v0 }
  0x10   :  { %337 = vmatpush3.bf16.msra.mxu0 %v336_v13 }
  0x11   :  { %338 = vmatprep.subr.bf16.mxu0 %v357_v0 }
  0x14   :  { %340 = vmatpush3.bf16.msra.mxu0 %v339_v16 }
  0x15   :  { %341 = vmatprep.subr.bf16.mxu0 %v357_v0 }
  0x18   :  { %343 = vmatpush3.bf16.msra.mxu0 %v342_v19 }
  0x19   :  { %344 = vmatprep.subr.bf16.mxu0 %v357_v0 }
  0x1c   :  { %346 = vmatpush3.bf16.msra.mxu0 %v345_v22 }
  0x1d   :  { %347 = vmatprep.subr.bf16.mxu0 %v357_v0 }
  0x20   :  { %349 = vmatpush3.bf16.msra.mxu0 %v348_v25 }
  0x23   :  { %314 = vmatmul.mubr.f32.vlgmr.msra.gmra.mrb[0].mxu0 %v11_v26 }
  0xf6   :  { %v94_v27 = vpop.f32.mrb[0].mxu0 }
  0xf7   :  { %v315_v28 = vpop.f32.mrb[1].mxu0  ;;  %317 = vmatpush3.xpose.msra.mxu1 %v94_v27 }
  0xf8   :  { %321 = vmatprep.subr.mxu1 %v359_v4 }
  0xfa   :  { %319 = vmatmul.mubr.f32.vlgmr.msra.gmra.mrb[0].mxu1 %v11_v26 }
  0xfb   :  { %322 = vmatpush3.msra.mxu1 %v11_v26  ;;  %323 = vmatprep.mubr.msk.f32.mxu1 %vm358_vm0, %v359_v4 }
 0x1cd   :  { %v164_v29 = vpop.f32.mrb[0].mxu1 }
 0x1ce   :  { %v320_v30 = vpop.f32.mrb[1].mxu1  ;;  %v169_v31 = vsel %vm168_vm1, %v164_v29, -inf }
 0x1cf   :  { %170 = vmax.xlane.f32.xlu0 %v169_v31 }
 0x25c   :  { %v171_v32 = vpop.xlane.xlu0 %170 }
 0x25d   :  { %v172_v33 = vsub.f32 %v164_v29, %v171_v32 }
 0x25f   :  { %v173_v34 = vmul.f32 1.442695, %v172_v33 }
 0x261   :  { %353 = vpow2.f32 %v173_v34 }
 0x26b   :  { %v354_v35 = vpop.eup %353 }
 0x26c   :  { %v175_v36 = vsel %vm168_vm1, %v354_v35, 0.0 }
 0x26d   :  { %176 = vadd.xlane.f32.xlu0 %v175_v36 }
 0x2fa   :  { %v177_v37 = vpop.xlane.xlu0 %176 }
 0x2fb   :  { %355 = vrcp.f32 %v177_v37 }
 0x305   :  { %v356_v38 = vpop.eup %355 }
 0x306   :  { %v179_v39 = vmul.f32 %v356_v38, %v354_v35 }
 0x308   :  { %324 = vmatmul.mubr.msk.f32.vlgmr.msra.gmra.mrb[2].mxu1 %vm168_vm1, %v179_v39 }
 0x3db   :  { %v249_v40 = vpop.f32.mrb[2].mxu1 }
 0x3dc   :  { %254 = vst.msk [vmem:[%s437_s2] sm:$0xff] %vm253_vm2, %v249_v40  ;;  %v325_v41 = vpop.f32.mrb[3].mxu1 }

</bundles_post_ra>
